<compile_context>
chip_gen: v6e
topology: v6e:2x2x1
jax: 0.10.0
libtpu: 0.0.40
codegen_flags: <defaults>
</compile_context>

<pallas_src>
import jax
import jax.numpy as jnp
from jax import lax
from jax.experimental import pallas as pl
from jax.experimental.pallas import tpu as pltpu


# --------------------------------------------------------------------------- #
# Shared per-tile conv helper
# --------------------------------------------------------------------------- #
def _conv_tile(x_ref, w_ref):
    """Conv1d ('same' padding, stride 1) on one batch tile.

    x_ref: (TN, C_in, L)    input tile (L on the lane axis)
    w_ref: (K, C_out, C_in) tap-major weights (VMEM-resident)
    returns (TN, C_out, L) float32
    """
    TN, C_in, L = x_ref.shape
    K = w_ref.shape[0]
    pad_l = (K - 1) // 2

    x = x_ref[...].astype(jnp.float32)

    # Hoisted lane-index iota + per-tap edge masks (zero the implicit padding).
    lane = lax.broadcasted_iota(jnp.int32, (C_in, L), 1)
    edge_mask = {}
    for k in range(K):
        off = k - pad_l
        if off != 0:
            edge_mask[off] = (lane + off >= 0) & (lane + off < L)

    rows = []
    for n in range(TN):                     # static unroll; TN kept small
        xn = x[n]                           # (C_in, L)
        acc = None
        for k in range(K):                  # static unroll over taps
            off = k - pad_l
            if off == 0:
                xs = xn
            else:
                # out[:, l] needs x[:, l + off]: lane-rotate, then zero the
                # positions that fall outside [0, L).
                s_amt = (-off) % L
                xs = pltpu.roll(xn, shift=s_amt, axis=1) if s_amt else xn
                xs = jnp.where(edge_mask[off], xs, 0.0)
            c = jnp.dot(w_ref[k], xs, preferred_element_type=jnp.float32)
            acc = c if acc is None else acc + c
        rows.append(acc)                    # (C_out, L) fp32
    return jnp.stack(rows, axis=0)          # (TN, C_out, L)


# --------------------------------------------------------------------------- #
# Pass 1: conv + per-tile partial batch statistics
# --------------------------------------------------------------------------- #
def _conv_stats_kernel(x_ref, w_ref, sum_ref, sq_ref):
    acc = _conv_tile(x_ref, w_ref)                                    # (TN,Co,L)
    s = jnp.sum(jnp.sum(acc, axis=2), axis=0, keepdims=True)          # (1, C_out)
    ss = jnp.sum(jnp.sum(acc * acc, axis=2), axis=0, keepdims=True)   # (1, C_out)
    sum_ref[...] = s[None]                                            # (1,1,C_out)
    sq_ref[...] = ss[None]


# --------------------------------------------------------------------------- #
# Pass 2: recompute conv (memory-bound) + fused BN scale/shift epilogue
# --------------------------------------------------------------------------- #
def _conv_apply_kernel(x_ref, w_ref, scale_ref, shift_ref, o_ref):
    acc = _conv_tile(x_ref, w_ref)              # (TN, C_out, L) fp32
    scale = scale_ref[...][None]                # (1, C_out, 1) -> lane broadcast
    shift = shift_ref[...][None]                # (1, C_out, 1)
    o_ref[...] = (acc * scale + shift).astype(o_ref.dtype)


# --------------------------------------------------------------------------- #
# Wrapper
# --------------------------------------------------------------------------- #
def _pick_tile_n(N, C_in, C_out, L, budget_bytes=4 * 1024 * 1024, max_tile=8):
    """Largest divisor of N (capped) whose per-step blocks fit a VMEM budget."""
    tile_n = 1
    for t in range(min(N, max_tile), 0, -1):
        if N % t == 0 and t * L * (C_in + C_out) * 4 <= budget_bytes:
            tile_n = t
            break
    return tile_n


def sampadding_conv1d_bn(x, weight, bias, gamma, beta, *, eps=1e-5, tile_n=None):
    """Forward of SampaddingConv1D_BN (training-mode BatchNorm1d).

    x:      (N, C_in, L) float32
    weight: (C_out, C_in, K) Conv1d weight
    bias:   (C_out,) Conv1d bias -- cancels exactly under training-mode BN
            (mean subtraction removes any per-channel constant); accepted for
            API parity but unused.
    gamma, beta: (C_out,) BatchNorm affine parameters
    returns (N, C_out, L) float32
    """
    del bias
    N, C_in, L = x.shape
    C_out, _, K = weight.shape
    if tile_n is None:
        tile_n = _pick_tile_n(N, C_in, C_out, L)
    assert N % tile_n == 0, "tile_n must divide the batch dimension"
    n_tiles = N // tile_n

    # Tap-major weight: w_t[k] is the (C_out, C_in) MXU LHS.  Tiny one-time op.
    w_t = jnp.transpose(weight, (2, 0, 1)).astype(jnp.float32)
    x = x.astype(jnp.float32)
    # NOTE: on v6e/v7x, casting x / w_t to bfloat16 here (keeping fp32
    # accumulation and fp32 stats) would halve HBM/VMEM traffic; kept fp32 so
    # the in-script reference check is tight.

    grid = (n_tiles,)
    x_spec = pl.BlockSpec((tile_n, C_in, L), lambda i: (i, 0, 0))
    w_spec = pl.BlockSpec((K, C_out, C_in), lambda i: (0, 0, 0))
    cparams = pltpu.CompilerParams(
        dimension_semantics=("parallel",),
        vmem_limit_bytes=32 * 1024 * 1024,
    )
    conv_flops = 2 * N * L * K * C_in * C_out

    # ---- Pass 1: conv + per-tile per-channel sum / sum-of-squares ------------
    sums, sqs = pl.pallas_call(
        _conv_stats_kernel,
        out_shape=(
            jax.ShapeDtypeStruct((n_tiles, 1, C_out), jnp.float32),
            jax.ShapeDtypeStruct((n_tiles, 1, C_out), jnp.float32),
        ),
        grid=grid,
        in_specs=[x_spec, w_spec],
        out_specs=(
            pl.BlockSpec((1, 1, C_out), lambda i: (i, 0, 0)),
            pl.BlockSpec((1, 1, C_out), lambda i: (i, 0, 0)),
        ),
        compiler_params=cparams,
        cost_estimate=pl.CostEstimate(
            flops=conv_flops,
            transcendentals=0,
            bytes_accessed=(x.size + w_t.size + 2 * n_tiles * C_out) * 4,
        ),
    )(x, w_t)

    # ---- Tiny reduction: fold partials into per-channel scale / shift --------
    count = jnp.float32(N * L)
    mean = jnp.sum(sums, axis=(0, 1)) / count
    var = jnp.sum(sqs, axis=(0, 1)) / count - mean * mean  # biased; PyTorch training BN
    scale = gamma.astype(jnp.float32) * lax.rsqrt(var + eps)
    shift = beta.astype(jnp.float32) - mean * scale
    scale2 = scale.reshape(C_out, 1)
    shift2 = shift.reshape(C_out, 1)

    # ---- Pass 2: conv recompute + fused normalize, lane-dense (…, L) output --
    out = pl.pallas_call(
        _conv_apply_kernel,
        out_shape=jax.ShapeDtypeStruct((N, C_out, L), jnp.float32),
        grid=grid,
        in_specs=[
            x_spec,
            w_spec,
            pl.BlockSpec((C_out, 1), lambda i: (0, 0)),
            pl.BlockSpec((C_out, 1), lambda i: (0, 0)),
        ],
        out_specs=pl.BlockSpec((tile_n, C_out, L), lambda i: (i, 0, 0)),
        compiler_params=cparams,
        cost_estimate=pl.CostEstimate(
            flops=conv_flops + 2 * N * C_out * L,
            transcendentals=0,
            bytes_accessed=(x.size + w_t.size + N * C_out * L) * 4,
        ),
    )(x, w_t, scale2, shift2)
    return out


# --------------------------------------------------------------------------- #
# Reference + test
# --------------------------------------------------------------------------- #
def _reference(x, weight, bias, gamma, beta, eps=1e-5):
    K = weight.shape[2]
    pad_l, pad_r = (K - 1) // 2, K // 2
    y = lax.conv_general_dilated(
        x, weight, window_strides=(1,), padding=[(pad_l, pad_r)],
        dimension_numbers=("NCH", "OIH", "NCH"))
    y = y + bias[None, :, None]
    mean = jnp.mean(y, axis=(0, 2), keepdims=True)
    var = jnp.mean(jnp.square(y - mean), axis=(0, 2), keepdims=True)
    return (y - mean) * lax.rsqrt(var + eps) * gamma[None, :, None] + beta[None, :, None]


if __name__ == "__main__":
    configs = [
        # (N, C_in, C_out, L, K, tile_n)
        (2, 4, 8, 16, 3, 1),        # module-like small shapes, multi-tile grid
        (4, 3, 16, 128, 4, None),   # even K (asymmetric pad), auto tile size
    ]
    key = jax.random.PRNGKey(0)
    for (N, C_in, C_out, L, K, tile_n) in configs:
        key, kx, kw, kb, kg, ke = jax.random.split(key, 6)
        x = jax.random.normal(kx, (N, C_in, L), jnp.float32)
        bound = 1.0 / (C_in * K) ** 0.5
        weight = jax.random.uniform(kw, (C_out, C_in, K), jnp.float32, -bound, bound)
        bias = jax.random.uniform(kb, (C_out,), jnp.float32, -bound, bound)
        gamma = 1.0 + 0.1 * jax.random.normal(kg, (C_out,), jnp.float32)
        beta = 0.05 * jax.random.normal(ke, (C_out,), jnp.float32)

        out = sampadding_conv1d_bn(x, weight, bias, gamma, beta, tile_n=tile_n)
        out = jax.block_until_ready(out)

        ref = _reference(x, weight, bias, gamma, beta)
        assert out.shape == (N, C_out, L)
        assert jnp.allclose(out, ref, atol=2e-4, rtol=2e-4), (
            f"mismatch vs reference for config {(N, C_in, C_out, L, K)}: "
            f"max abs err {jnp.max(jnp.abs(out - ref))}")

    print("KERNEL_OK")
</pallas_src>

<mosaic_0001>
module attributes {stable_mosaic.version = 11 : i64} {
  func.func @_conv_stats_kernel(%arg0: i32, %arg1: memref<1x4x16xf32, #tpu.memory_space<vmem>>, %arg2: memref<3x8x4xf32, #tpu.memory_space<vmem>>, %arg3: memref<1x1x8xf32, #tpu.memory_space<vmem>>, %arg4: memref<1x1x8xf32, #tpu.memory_space<vmem>>) attributes {dimension_semantics = [#tpu.dimension_semantics<parallel>], iteration_bounds = array<i64: 2>, scalar_prefetch = 0 : i64, scratch_operands = 0 : i64, tpu.core_type = #tpu.core_type<tc>, window_params = [{transform_indices = @transform_0, window_bounds = array<i64: 1, 4, 16>}, {pipeline_mode = #tpu.pipeline_mode<synchronous>, transform_indices = @transform_1, window_bounds = array<i64: 3, 8, 4>}, {transform_indices = @transform_2, window_bounds = array<i64: 1, 1, 8>}, {transform_indices = @transform_3, window_bounds = array<i64: 1, 1, 8>}]} {
    %c0 = arith.constant 0 : index
    %c0_0 = arith.constant 0 : index
    %c0_1 = arith.constant 0 : index
    %0 = vector.load %arg1[%c0, %c0_0, %c0_1] : memref<1x4x16xf32, #tpu.memory_space<vmem>>, vector<1x4x16xf32>
    %1 = tpu.iota {dimensions = array<i32: 1>} : vector<4x16xi32>
    %c-1_i32 = arith.constant -1 : i32
    %2 = vector.broadcast %c-1_i32 : i32 to vector<4x16xi32>
    %3 = arith.addi %1, %2 : vector<4x16xi32>
    %c0_i32 = arith.constant 0 : i32
    %4 = vector.broadcast %c0_i32 : i32 to vector<4x16xi32>
    %5 = arith.cmpi sge, %3, %4 : vector<4x16xi32>
    %c-1_i32_2 = arith.constant -1 : i32
    %6 = vector.broadcast %c-1_i32_2 : i32 to vector<4x16xi32>
    %7 = arith.addi %1, %6 : vector<4x16xi32>
    %c16_i32 = arith.constant 16 : i32
    %8 = vector.broadcast %c16_i32 : i32 to vector<4x16xi32>
    %9 = arith.cmpi slt, %7, %8 : vector<4x16xi32>
    %10 = arith.andi %5, %9 : vector<4x16xi1>
    %c1_i32 = arith.constant 1 : i32
    %11 = vector.broadcast %c1_i32 : i32 to vector<4x16xi32>
    %12 = arith.addi %1, %11 : vector<4x16xi32>
    %c0_i32_3 = arith.constant 0 : i32
    %13 = vector.broadcast %c0_i32_3 : i32 to vector<4x16xi32>
    %14 = arith.cmpi sge, %12, %13 : vector<4x16xi32>
    %c1_i32_4 = arith.constant 1 : i32
    %15 = vector.broadcast %c1_i32_4 : i32 to vector<4x16xi32>
    %16 = arith.addi %1, %15 : vector<4x16xi32>
    %c16_i32_5 = arith.constant 16 : i32
    %17 = vector.broadcast %c16_i32_5 : i32 to vector<4x16xi32>
    %18 = arith.cmpi slt, %16, %17 : vector<4x16xi32>
    %19 = arith.andi %14, %18 : vector<4x16xi1>
    %20 = vector.shape_cast %0 : vector<1x4x16xf32> to vector<4x16xf32>
    %c1_i32_6 = arith.constant 1 : i32
    %21 = tpu.dynamic_rotate %20 by %c1_i32_6 dim 1 : vector<4x16xf32>, i32 -> vector<4x16xf32>
    %cst = arith.constant 0.000000e+00 : f32
    %22 = vector.broadcast %cst : f32 to vector<4x16xf32>
    %23 = arith.select %10, %21, %22 : vector<4x16xi1>, vector<4x16xf32>
    %c0_7 = arith.constant 0 : index
    %c0_8 = arith.constant 0 : index
    %c0_9 = arith.constant 0 : index
    %24 = vector.load %arg2[%c0_7, %c0_8, %c0_9] : memref<3x8x4xf32, #tpu.memory_space<vmem>>, vector<1x8x4xf32>
    %25 = vector.shape_cast %24 : vector<1x8x4xf32> to vector<8x4xf32>
    %cst_10 = arith.constant dense<0.000000e+00> : vector<8x16xf32>
    %26 = tpu.matmul %25, %23, %cst_10 {dimension_numbers = #tpu.dot_dimension_numbers<[1], [0], [0], [1], [0, 0, 1, 1], [], []>} : vector<8x4xf32>, vector<4x16xf32>, vector<8x16xf32> -> vector<8x16xf32>
    %c1 = arith.constant 1 : index
    %c0_11 = arith.constant 0 : index
    %c0_12 = arith.constant 0 : index
    %27 = vector.load %arg2[%c1, %c0_11, %c0_12] : memref<3x8x4xf32, #tpu.memory_space<vmem>>, vector<1x8x4xf32>
    %28 = vector.shape_cast %27 : vector<1x8x4xf32> to vector<8x4xf32>
    %cst_13 = arith.constant dense<0.000000e+00> : vector<8x16xf32>
    %29 = tpu.matmul %28, %20, %cst_13 {dimension_numbers = #tpu.dot_dimension_numbers<[1], [0], [0], [1], [0, 0, 1, 1], [], []>} : vector<8x4xf32>, vector<4x16xf32>, vector<8x16xf32> -> vector<8x16xf32>
    %30 = arith.addf %26, %29 : vector<8x16xf32>
    %c15_i32 = arith.constant 15 : i32
    %31 = tpu.dynamic_rotate %20 by %c15_i32 dim 1 : vector<4x16xf32>, i32 -> vector<4x16xf32>
    %cst_14 = arith.constant 0.000000e+00 : f32
    %32 = vector.broadcast %cst_14 : f32 to vector<4x16xf32>
    %33 = arith.select %19, %31, %32 : vector<4x16xi1>, vector<4x16xf32>
    %c2 = arith.constant 2 : index
    %c0_15 = arith.constant 0 : index
    %c0_16 = arith.constant 0 : index
    %34 = vector.load %arg2[%c2, %c0_15, %c0_16] : memref<3x8x4xf32, #tpu.memory_space<vmem>>, vector<1x8x4xf32>
    %35 = vector.shape_cast %34 : vector<1x8x4xf32> to vector<8x4xf32>
    %cst_17 = arith.constant dense<0.000000e+00> : vector<8x16xf32>
    %36 = tpu.matmul %35, %33, %cst_17 {dimension_numbers = #tpu.dot_dimension_numbers<[1], [0], [0], [1], [0, 0, 1, 1], [], []>} : vector<8x4xf32>, vector<4x16xf32>, vector<8x16xf32> -> vector<8x16xf32>
    %37 = arith.addf %30, %36 : vector<8x16xf32>
    %38 = vector.shape_cast %37 : vector<8x16xf32> to vector<1x8x16xf32>
    %cst_18 = arith.constant dense<0.000000e+00> : vector<1x8xf32>
    %39 = vector.multi_reduction <add>, %38, %cst_18 [2] : vector<1x8x16xf32> to vector<1x8xf32>
    %cst_19 = arith.constant dense<0.000000e+00> : vector<8xf32>
    %40 = vector.multi_reduction <add>, %39, %cst_19 [0] : vector<1x8xf32> to vector<8xf32>
    %41 = vector.shape_cast %40 : vector<8xf32> to vector<1x8xf32>
    %42 = arith.mulf %38, %38 : vector<1x8x16xf32>
    %cst_20 = arith.constant dense<0.000000e+00> : vector<1x8xf32>
    %43 = vector.multi_reduction <add>, %42, %cst_20 [2] : vector<1x8x16xf32> to vector<1x8xf32>
    %cst_21 = arith.constant dense<0.000000e+00> : vector<8xf32>
    %44 = vector.multi_reduction <add>, %43, %cst_21 [0] : vector<1x8xf32> to vector<8xf32>
    %45 = vector.shape_cast %44 : vector<8xf32> to vector<1x8xf32>
    %46 = vector.shape_cast %41 : vector<1x8xf32> to vector<1x1x8xf32>
    %c0_22 = arith.constant 0 : index
    %c0_23 = arith.constant 0 : index
    %c0_24 = arith.constant 0 : index
    %47 = vector.load %arg3[%c0_22, %c0_23, %c0_24] : memref<1x1x8xf32, #tpu.memory_space<vmem>>, vector<1x1x8xf32>
    tpu.vector_store %arg3[%c0_22, %c0_23, %c0_24], %46 {strides = array<i32>} : memref<1x1x8xf32, #tpu.memory_space<vmem>>, vector<1x1x8xf32>,
    %48 = vector.shape_cast %45 : vector<1x8xf32> to vector<1x1x8xf32>
    %c0_25 = arith.constant 0 : index
    %c0_26 = arith.constant 0 : index
    %c0_27 = arith.constant 0 : index
    %49 = vector.load %arg4[%c0_25, %c0_26, %c0_27] : memref<1x1x8xf32, #tpu.memory_space<vmem>>, vector<1x1x8xf32>
    tpu.vector_store %arg4[%c0_25, %c0_26, %c0_27], %48 {strides = array<i32>} : memref<1x1x8xf32, #tpu.memory_space<vmem>>, vector<1x1x8xf32>,
    return
  }
  func.func @transform_0(%arg0: i32) -> (i32, i32, i32) {
    %c0_i32 = arith.constant 0 : i32
    %c0_i32_0 = arith.constant 0 : i32
    %c0_i32_1 = arith.constant 0 : i32
    return %arg0, %c0_i32, %c0_i32_0 : i32, i32, i32
  }
  func.func @transform_1(%arg0: i32) -> (i32, i32, i32) {
    %c0_i32 = arith.constant 0 : i32
    %c0_i32_0 = arith.constant 0 : i32
    %c0_i32_1 = arith.constant 0 : i32
    %c0_i32_2 = arith.constant 0 : i32
    return %c0_i32, %c0_i32_0, %c0_i32_1 : i32, i32, i32
  }
  func.func @transform_2(%arg0: i32) -> (i32, i32, i32) {
    %c0_i32 = arith.constant 0 : i32
    %c0_i32_0 = arith.constant 0 : i32
    %c0_i32_1 = arith.constant 0 : i32
    return %arg0, %c0_i32, %c0_i32_0 : i32, i32, i32
  }
  func.func @transform_3(%arg0: i32) -> (i32, i32, i32) {
    %c0_i32 = arith.constant 0 : i32
    %c0_i32_0 = arith.constant 0 : i32
    %c0_i32_1 = arith.constant 0 : i32
    return %arg0, %c0_i32, %c0_i32_0 : i32, i32, i32
  }
}

</mosaic_0001>

<bundles_post_ra>
// kernel: tpu_custom_call.1
= control target key start
LH: loop header
LB: loop body
LE: loop exit
PB: predicated region body
PF: predicated region fallthrough
CT: control target
= control target key end

     0   :  { %9 = vsyncpa [#allocation3], 0  ;;  %s937_s0 = inlined_call_operand.vmem [shape: f32[2,4,16], index: 0, kind: input, shape index: {}]   ;;  %s938_s1 = inlined_call_operand.vmem [shape: f32[3,8,4], index: 1, kind: input, shape index: {}]   ;;  %s939_s2 = inlined_call_operand.hbm [shape: f32[2,1,8], index: 2, kind: output, shape index: {0}]   ;;  %s940_s3 = inlined_call_operand.hbm [shape: f32[2,1,8], index: 3, kind: output, shape index: {1}]  }
   0x1   :  { %11 = vsyncpa [#allocation3 + $0x1], 0 }
   0x2   :  { %12 = vsyncpa [#allocation5], 0 }
   0x3   :  { %14 = vsyncpa [#allocation5 + $0x1], 0  ;;  %s782_s12 = smov 0   ;;  %s784_s13 = smov 0  }
   0x4   :  { %s786_s14 = smov 0   ;;  %s788_s15 = smov 0  }
   0x5 LB: > { %s803_s16 = sadd.s32 4294967295, %s753_s15   ;;  %s576_s17 = sadd.s32 4294967294, %s753_s15   ;;  %s753_s15 = sphi %s788_s15, %s946_s15   ;;  %s749_s14 = sphi %s786_s14, %s945_s14   ;;  %s745_s13 = sphi %s784_s13, %s944_s13   ;;  %s741_s12 = sphi %s782_s12, %s943_s12  }
   0x6   : > { %s807_s18 = sadd.s32 1, %s753_s15   ;;  %s74_s19 = sadd.s32 1, %s749_s14 }
   0x7   : > { %s71_s20 = ssub.s32 %s753_s15, %s807_s18  ;;  %p84_p0 = scmp.ne.s32.totalorder %s749_s14, %s745_s13 }
   0x8   : > { %p72_p1 = scmp.eq.s32.totalorder %s71_s20, 0  ;;  %p85_p2 = scmp.eq.s32.totalorder %s803_s16, 1 }
   0x9   : > { %p90_p3 = scmp.ne.s32.totalorder %s745_s13, %s741_s12  ;;  %p91_p4 = scmp.eq.s32.totalorder %s576_s17, 1 }
   0xa   : > { %s818_s21 = scalar_select %p72_p1, %s749_s14, %s74_s19  }
   0xb   : > { %p820_p5 = por %p85_p2, %p84_p0  ;;  %p824_p6 = por %p91_p4, %p90_p3 }
   0xc   : > { %p579_p7 = scmp.ge.s32.totalorder %s753_s15, 1  ;;  %p145_p8 = scmp.lt.s32.totalorder %s753_s15, 3 }
   0xe   : > { %p146_p9 = pnand %p579_p7, %p145_p8 }
   0xf   : > { %p171_p10 = scmp.lt.s32.totalorder (!%p146_p9), %s803_s16, 1  ;;  %s755_s29 = smov (!%p146_p9), 16  }
  0x10   : > { %149 = sbr.rel (%p146_p9) target bundleno = 750 (0x2ee), region = 28  ;;  %s758_s5 = smov (!%p146_p9), 113  }
  0x11   : > { %s759_s6 = smov (!%p146_p9), 127   ;;  %s853_s11 = sand.u32 (!%p146_p9), 1, %s745_s13  }
  0x12   : > { %s589_s17 = sshll.u32 (!%p146_p9), %s803_s16, 4  ;;  %s164_s19 = scalar_lea.vmem (!%p146_p9), [#allocation2], %s853_s11 }
  0x13   : > { %s480_s20 = sshll.u32 (!%p146_p9), %s164_s19, 4  ;;  %s871_s30 = scalar_lea.hbm (!%p146_p9), %s940_s3, %s589_s17  ;;  %s865_s20 = int_to_ptr.vmem [resolvable:$true] %s480_s20 }
  0x14   : > { %s464_s4 = scalar_lea.sflag (!%p146_p9), [#allocation3], %s853_s11 }
  0x15   : > { %s172_s24 = scalar_select %p171_p10, %s803_s16, 1  ;;  %vm186_vm0 = vcmask 1047680   ;;  %v756_v3 = vmov 0.0   ;;  %vm205_vm1 = vcmask 1043456   ;;  %vm757_vm2 = vmmov 0   ;;  %v581_v4 = vld [vmem:[%s938_s1 + $0x8] sm:$0xff] }
  0x16   : > { %604 = vmatprep.subr.mxu1 %v756_v3  ;;  %599 = vmatprep.subr.mxu0 %v756_v3  ;;  %vm201_vm3 = vcmask 31744   ;;  %v176_v7 = vlaneseq  ;;  %v198_v12 = vld [vmem:[%s938_s1] sm:$0xff]  ;;  %v586_v15 = vld [vmem:[%s938_s1 + $0x10] sm:$0xff]  ;;  %vm438_vm8 = vcmask 130048   ;;  %vm454_vm9 = vcmask 57344  }
  0x17   : > { %s580_s25 = sshll.u32 %s172_s24, 2  ;;  %601 = vmatprep.mubr.msk.f32.mxu0 %vm757_vm2, %v756_v3  ;;  %606 = vmatprep.mubr.msk.f32.mxu1 %vm757_vm2, %v756_v3  ;;  %s170_s24 = scalar_lea.vmem [#allocation4], %s853_s11 }
  0x18   : > { %s174_s28 = scalar_lea.vmem %s937_s0, %s580_s25  ;;  %v177_v8 = vand.u32 127, %v176_v7  ;;  %v450_v28 = vshrl.u32 %v176_v7, 7  ;;  %s493_s25 = sshll.u32 %s170_s24, 4  ;;  %s873_s25 = int_to_ptr.vmem [resolvable:$true] %s493_s25 }
  0x19   : > { %v175_v0 = vld [vmem:[%s174_s28] sm:$0xf]  ;;  %s863_s28 = scalar_lea.hbm %s939_s2, %s589_s17 }
  0x1a   : > { %187 = vrot.lane.b32.xlu0 %v175_v0, %s755_s29  ;;  %600 = vmatpush3.msk.msra.mxu0 %vm205_vm1, %v175_v0  ;;  %v178_v9 = vadd.s32 4294967295, %v177_v8  ;;  %v182_v10 = vadd.s32 1, %v177_v8  ;;  %v451_v29 = vsub.s32 %v177_v8, %v450_v28 }
  0x1b   : > { %602 = vmatmul.mubr.msk.f32.vlgmr.msra.gmra.mxu0 %vm201_vm3, %v581_v4  ;;  %609 = vmatprep.subr.mxu0 %v756_v3 }
  0x1c   : > { %611 = vmatprep.mubr.msk.f32.mxu0 %vm757_vm2, %v756_v3  ;;  %vm179_vm4 = vcmp.ge.s32.totalorder %v178_v9, 0  ;;  %vm180_vm5 = vcmp.lt.s32.totalorder %v178_v9, 16  ;;  %vm184_vm7 = vcmp.lt.s32.totalorder %v182_v10, 16 }
  0x1d   : > { %vm181_vm6 = vmand %vm179_vm4, %vm180_vm5 }
  0x8c   : > { %v188_v1 = vpop.permute.xlu0 %187 }
  0x8d   : > { %v189_v2 = vsel %vm186_vm0, %v188_v1, %v175_v0 }
  0x8e   : > { %190 = vrot.lane.b32.xlu0 %v189_v2, %s755_s29 }
  0xdb   : > { %v275_v17 = vpop.f32.mrf.mxu0 }
  0xdd   : > { %v603_v18 = vpop.f32.mrf.mxu0 }
 0x100   : > { %v191_v5 = vpop.permute.xlu0 %190 }
 0x101   : > { %v192_v6 = vsel %vm186_vm0, %v191_v5, %v175_v0 }
 0x102   : > { %194 = vrot.lane.b32.xlu1 %v192_v6, %s758_s5  ;;  %s663_s5 = scalar_lea.vmem %s865_s20, 16 }
 0x103   : > { %p664_p11 = scmp.ne.s32.totalorder %s865_s20, %s663_s5 }
 0x105   : > { %p665_p12 = pnand %p664_p11, %p820_p5 }
 0x106   : > { %355 = vrot.lane.b32.xlu1 %v192_v6, %s759_s6  ;;  %s760_s6 = smov [#allocation2]  }
 0x107   : > { %p666_p13 = pneg %p665_p12  ;;  %s667_s7 = sshll.u32 %s760_s6, 4  ;;  %s668_s7 = int_to_ptr.vmem [resolvable:$false] %s667_s7 }
 0x108   : > { %s669_s8 = scalar_lea.vmem %s668_s7, 32  ;;  %p670_p0 = scmp.lt.s32.totalorder %s865_s20, %s668_s7 }
 0x109   : > { %p671_p1 = scmp.lt.s32.totalorder %s669_s8, %s663_s5 }
 0x10b   : > { %p672_p2 = por %p671_p1, %p670_p0 }
 0x10d   : > { %p673_p3 = pnand %p672_p2, %p666_p13 }
 0x174   : > { %v195_v11 = vpop.permute.xlu1 %194 }
 0x175   : > { %v197_v13 = vsel %vm181_vm6, %v195_v11, 0.0 }
 0x176   : > { %605 = vmatpush3.msk.msra.mxu1 %vm205_vm1, %v197_v13 }
 0x177   : > { %607 = vmatmul.mubr.msk.f32.vlgmr.msra.gmra.mxu1 %vm201_vm3, %v198_v12 }
 0x178   : > { %v356_v14 = vpop.permute.xlu1 %355 }
 0x179   : > { %v358_v16 = vsel %vm184_vm7, %v356_v14, 0.0 }
 0x17a   : > { %610 = vmatpush3.msk.msra.mxu0 %vm205_vm1, %v358_v16 }
 0x17b   : > { %612 = vmatmul.mubr.msk.f32.vlgmr.msra.gmra.mxu0 %vm201_vm3, %v586_v15 }
 0x237   : > { %v351_v19 = vpop.f32.mrf.mxu1 }
 0x238   : > { %v352_v21 = vadd.f32 %v351_v19, %v275_v17 }
 0x239   : > { %v608_v20 = vpop.f32.mrf.mxu1 }
 0x23b   : > { %v433_v22 = vpop.f32.mrf.mxu0 }
 0x23c   : > { %v437_v23 = vadd.f32 %v433_v22, %v352_v21 }
 0x23d   : > { %v613_v24 = vpop.f32.mrf.mxu0 }
 0x23e   : > { %v439_v25 = vsel %vm438_vm8, %v437_v23, 0.0  ;;  %v443_v26 = vmul.f32 %v437_v23, %v437_v23 }
 0x23f   : > { %440 = vadd.xlane.f32.xlu0 %v439_v25 }
 0x240   : > { %v444_v27 = vsel %vm438_vm8, %v443_v26, 0.0 }
 0x241   : > { %445 = vadd.xlane.f32.xlu1 %v444_v27 }
 0x2c8   : > { %v441_v30 = vpop.xlane.xlu0 %440 }
 0x2c9   : > { %v452_v31 = vrot.slane %v441_v30, %v451_v29 }
 0x2ca   : > { %v446_v32 = vpop.xlane.xlu1 %445 }
 0x2cb   : > { %v460_v33 = vrot.slane %v446_v32, %v451_v29  ;;  %455 = vst.msk [vmem:[%s164_s19] sm:$0x1] %vm454_vm9, %v452_v31 }
 0x2cc   : > { %676 = shalt.err (!%p673_p3)
}
 0x2cd   : > { %s677_s9 = scalar_lea.hbm %s863_s28, 16  ;;  %s681_s19 = scalar_lea.hbm %s939_s2, 32 }
 0x2ce   : > { %p678_p4 = scmp.ne.s32.totalorder %s863_s28, %s677_s9  ;;  %p682_p9 = scmp.lt.s32.totalorder %s863_s28, %s939_s2 }
 0x2cf   : > { %p683_p10 = scmp.lt.s32.totalorder %s681_s19, %s677_s9 }
 0x2d0   : > { %p679_p7 = pnand %p678_p4, %p820_p5 }
 0x2d1   : > { %p684_p11 = por %p683_p10, %p682_p9 }
 0x2d2   : > { %p680_p8 = pneg %p679_p7 }
 0x2d4   : > { %p685_p12 = pnand %p684_p11, %p680_p8 }
 0x2d6   : > { %688 = shalt.err (!%p685_p12)
}
 0x2d7   : > { %614 = dma.vmem_to_hbm [thread:$0]  (%p820_p5), %s865_s20, 16, %s863_s28, %s464_s4   ;;  %462 = vst.msk [vmem:[%s170_s24] sm:$0x1] %vm454_vm9, %v460_v33 }
 0x2d8   : > { %s468_s16 = scalar_lea.sflag [#allocation5], %s853_s11  ;;  %s689_s29 = scalar_lea.vmem %s873_s25, 16 }
 0x2d9   : > { %p690_p13 = scmp.ne.s32.totalorder %s873_s25, %s689_s29  ;;  %s761_s5 = smov [#allocation4]  }
 0x2da   : > { %s693_s6 = sshll.u32 %s761_s5, 4  ;;  %s694_s6 = int_to_ptr.vmem [resolvable:$false] %s693_s6 }
 0x2db   : > { %p691_p0 = pnand %p690_p13, %p820_p5  ;;  %s695_s7 = scalar_lea.vmem %s694_s6, 32 }
 0x2dc   : > { %p696_p2 = scmp.lt.s32.totalorder %s873_s25, %s694_s6  ;;  %p697_p3 = scmp.lt.s32.totalorder %s695_s7, %s689_s29 }
 0x2dd   : > { %p692_p1 = pneg %p691_p0 }
 0x2de   : > { %p698_p4 = por %p697_p3, %p696_p2 }
 0x2e0   : > { %p699_p7 = pnand %p698_p4, %p692_p1 }
 0x2e2   : > { %702 = shalt.err (!%p699_p7)
}
 0x2e3   : > { %s703_s20 = scalar_lea.hbm %s871_s30, 16  ;;  %s707_s28 = scalar_lea.hbm %s940_s3, 32 }
 0x2e4   : > { %p704_p8 = scmp.ne.s32.totalorder %s871_s30, %s703_s20  ;;  %p708_p11 = scmp.lt.s32.totalorder %s871_s30, %s940_s3 }
 0x2e5   : > { %p709_p12 = scmp.lt.s32.totalorder %s707_s28, %s703_s20 }
 0x2e6   : > { %p705_p9 = pnand %p704_p8, %p820_p5 }
 0x2e7   : > { %p710_p13 = por %p709_p12, %p708_p11 }
 0x2e8   : > { %p706_p10 = pneg %p705_p9 }
 0x2ea   : > { %p711_p0 = pnand %p710_p13, %p706_p10 }
 0x2ec   : > { %714 = shalt.err (!%p711_p0)
}
 0x2ed   : > { %615 = dma.vmem_to_hbm [thread:$0]  (%p820_p5), %s873_s25, 16, %s871_s30, %s468_s16  }
 0x2ee PF: > { %p625_p1 = scmp.ge.s32.totalorder %s753_s15, 2  ;;  %s505_s9 = sand.u32 1, %s741_s12  }
 0x2ef   : > { %s506_s10 = scalar_lea.sflag [#allocation3], %s505_s9 }
 0x2f0   : > { %p619_p2 = pnand %p625_p1, %p824_p6 }
 0x2f2   : > { %p620_p3 = pneg %p619_p2 }
 0x2f4   : > { %732 = dma.done.wait (%p620_p3), %s506_s10, 16  }
 0x2f5   : > { %734 = vsyncadd (%p620_p3), %s506_s10, 4294967280  ;;  %s514_s17 = scalar_lea.sflag [#allocation5], %s505_s9 }
 0x2f6   : > { %736 = dma.done.wait (%p620_p3), %s514_s17, 16  }
 0x2f7   : > { %738 = vsyncadd (%p620_p3), %s514_s17, 4294967280  ;;  %p17_p5 = scmp.ge.s32.totalorder %s807_s18, 4   ;;  %s943_s12 = smov %s745_s13 }
 0x2f8   : > { %s944_s13 = smov %s749_s14  ;;  %s945_s14 = smov %s818_s21 }
 0x2f9   : > { %s946_s15 = smov %s807_s18  ;;  %19 = sbr.rel (!%p17_p5) target bundleno = 5 (0x5), region = 82 }
 0x2fe   :  { %518 = vsyncpa [#allocation3], 1 }
 0x2ff   :  { %520 = vsyncpa [#allocation3 + $0x1], 1 }
 0x300   :  { %521 = vsyncpa [#allocation5], 1 }
 0x301   :  { %523 = vsyncpa [#allocation5 + $0x1], 1 }

</bundles_post_ra>
